<compile_context>
chip_gen: v7x
topology: tpu7x:2x2x1
jax: 0.10.0
libtpu: 0.0.40
codegen_flags: <defaults>
</compile_context>

<pallas_src>
import jax
import jax.numpy as jnp
from jax.experimental import pallas as pl
from jax.experimental.pallas import tpu as pltpu

_LANE_WIDTH = 1024      # multiple of 128 -> long contiguous DMA descriptors, unmasked stores
_MAX_BLOCK_ROWS = 512   # 512 x 1024 x 4B = 2 MiB per f32 tile


def _copy_kernel(x_ref, o_ref):
    # The entire "forward" of PortfolioOptimizerModel is x -> x.
    o_ref[...] = x_ref[...]


def _round_up(n, m):
    return pl.cdiv(n, m) * m


@jax.jit
def portfolio_optimizer_forward(x):
    """Pallas implementation of PortfolioOptimizerModel.forward (identity)."""
    orig_shape = x.shape
    n_total = 1
    for d in orig_shape:
        n_total *= d

    if n_total == 0:
        return x

    # Lane-dense padded 2-D slab: (rows, 1024).
    padded_total = _round_up(n_total, _LANE_WIDTH)
    rows = padded_total // _LANE_WIDTH

    if rows <= _MAX_BLOCK_ROWS:
        # Single grid step; block == full array dims (always legal).
        block_rows = rows
        padded_rows = rows
    else:
        # Tile the row axis; block_rows is a multiple of 8, rows padded to a multiple of it.
        block_rows = _MAX_BLOCK_ROWS
        padded_rows = _round_up(rows, block_rows)

    pad = padded_rows * _LANE_WIDTH - n_total
    xf = x.reshape(-1)
    if pad > 0:
        xf = jnp.pad(xf, (0, pad))
    x2d = xf.reshape(padded_rows, _LANE_WIDTH)

    grid = (padded_rows // block_rows,)

    out2d = pl.pallas_call(
        _copy_kernel,
        out_shape=jax.ShapeDtypeStruct(x2d.shape, x2d.dtype),
        grid=grid,
        in_specs=[pl.BlockSpec((block_rows, _LANE_WIDTH), lambda i: (i, 0))],
        out_specs=pl.BlockSpec((block_rows, _LANE_WIDTH), lambda i: (i, 0)),
        input_output_aliases={0: 0},
        compiler_params=pltpu.CompilerParams(
            dimension_semantics=("parallel",),
        ),
    )(x2d)

    return out2d.reshape(-1)[:n_total].reshape(orig_shape)


if __name__ == "__main__":
    key = jax.random.PRNGKey(0)
    # Small NCHW input consistent with a conv-style model interface.
    x = jax.random.normal(key, (2, 4, 16, 16), dtype=jnp.float32)

    y = portfolio_optimizer_forward(x)
    y = jax.block_until_ready(y)

    # Verify identity semantics exactly.
    assert y.shape == x.shape
    assert y.dtype == x.dtype
    assert bool(jnp.array_equal(y, x))

    print("KERNEL_OK")
</pallas_src>

<mosaic_0001>
module attributes {stable_mosaic.version = 11 : i64} {
  func.func @_copy_kernel(%arg0: i32, %arg1: memref<2x1024xf32, #tpu.memory_space<vmem>>, %arg2: memref<2x1024xf32, #tpu.memory_space<vmem>>) attributes {dimension_semantics = [#tpu.dimension_semantics<parallel>], iteration_bounds = array<i64: 1>, scalar_prefetch = 0 : i64, scratch_operands = 0 : i64, tpu.core_type = #tpu.core_type<tc>, window_params = [{transform_indices = @transform_0, window_bounds = array<i64: 2, 1024>}, {transform_indices = @transform_1, window_bounds = array<i64: 2, 1024>}]} {
    %c0 = arith.constant 0 : index
    %c0_0 = arith.constant 0 : index
    %0 = vector.load %arg1[%c0, %c0_0] : memref<2x1024xf32, #tpu.memory_space<vmem>>, vector<2x1024xf32>
    %c0_1 = arith.constant 0 : index
    %c0_2 = arith.constant 0 : index
    %1 = vector.load %arg2[%c0_1, %c0_2] : memref<2x1024xf32, #tpu.memory_space<vmem>>, vector<2x1024xf32>
    tpu.vector_store %arg2[%c0_1, %c0_2], %0 {strides = array<i32>} : memref<2x1024xf32, #tpu.memory_space<vmem>>, vector<2x1024xf32>,
    return
  }
  func.func @transform_0(%arg0: i32) -> (i32, i32) {
    %c0_i32 = arith.constant 0 : i32
    %c0_i32_0 = arith.constant 0 : i32
    return %arg0, %c0_i32 : i32, i32
  }
  func.func @transform_1(%arg0: i32) -> (i32, i32) {
    %c0_i32 = arith.constant 0 : i32
    %c0_i32_0 = arith.constant 0 : i32
    return %arg0, %c0_i32 : i32, i32
  }
}

</mosaic_0001>

<bundles_post_ra>
// kernel: portfolio_optimizer_forward.1
= control target key start
LH: loop header
LB: loop body
LE: loop exit
PB: predicated region body
PF: predicated region fallthrough
CT: control target
= control target key end

     0   :  { %s38_s0 = inlined_call_operand.vmem [shape: f32[2,1024], index: 0, kind: input, shape index: {}, may-alias: {0,1}]   ;;  %s39_s1 = inlined_call_operand.vmem [shape: f32[2,1024], index: 1, kind: output, shape index: {}, may-alias: {0,1}]  }
   0x1   :  { %v8_v0 = vld [vmem:[%s38_s0] sm:$0xff]  ;;  %v9_v1 = vld [vmem:[%s38_s0 + $0x8] sm:$0xff] }
   0x2   :  { %10 = vst [vmem:[%s39_s1] sm:$0xff] %v8_v0  ;;  %11 = vst [vmem:[%s39_s1 + $0x8] sm:$0xff] %v9_v1 }

</bundles_post_ra>
